<compile_context>
chip_gen: v7x
topology: tpu7x:2x2x1
jax: 0.10.0
libtpu: 0.0.40
codegen_flags: <defaults>
</compile_context>

<pallas_src>
import functools

import jax
import jax.numpy as jnp
from jax.experimental import pallas as pl
from jax.experimental.pallas import tpu as pltpu


def _mlp_kernel(x_ref, w1_ref, b1_ref, w2_ref, b2_ref, w3_ref, b3_ref,
                wc_ref, bc_ref, out_ref):
    bf16 = jnp.bfloat16

    # Layer 1: bf16 MXU matmul, f32 accumulate, f32 bias + ReLU.
    x = x_ref[...].astype(bf16)
    h = jnp.dot(x, w1_ref[...], preferred_element_type=jnp.float32) + b1_ref[...]
    h = jnp.maximum(h, 0.0)

    # Layer 2.
    h = jnp.dot(h.astype(bf16), w2_ref[...],
                preferred_element_type=jnp.float32) + b2_ref[...]
    h = jnp.maximum(h, 0.0)

    # Layer 3.
    h = jnp.dot(h.astype(bf16), w3_ref[...],
                preferred_element_type=jnp.float32) + b3_ref[...]
    h = jnp.maximum(h, 0.0)

    # Classifier (output columns zero-padded to 128 -> lane-dense store).
    logits = jnp.dot(h.astype(bf16), wc_ref[...],
                     preferred_element_type=jnp.float32) + bc_ref[...]
    out_ref[...] = logits.astype(out_ref.dtype)


@functools.partial(jax.jit, static_argnames=("tile_n",))
def pointwise_mlp_forward(x, params, *, tile_n=256):
    """x: (N, in_dim). params: weights in (in, out) layout, biases (1, out), f32."""
    N, in_dim = x.shape

    bf16 = jnp.bfloat16
    f32 = jnp.float32
    w1 = params["w1"].astype(bf16)
    w2 = params["w2"].astype(bf16)
    w3 = params["w3"].astype(bf16)
    wc = params["wc"].astype(bf16)
    b1 = params["b1"].astype(f32)
    b2 = params["b2"].astype(f32)
    b3 = params["b3"].astype(f32)
    bc = params["bc"].astype(f32)

    fc_dim = w3.shape[1]
    out_dim = wc.shape[1]

    # Lane-dense output: pad classifier columns up to a multiple of 128.
    out_pad = 128 * pl.cdiv(out_dim, 128)
    wc_p = jnp.zeros((fc_dim, out_pad), bf16).at[:, :out_dim].set(wc)
    bc_p = jnp.zeros((1, out_pad), f32).at[:, :out_dim].set(bc)

    # Pad the node dimension up to a multiple of tile_n (zero rows are
    # harmless for a pointwise MLP and sliced off below).
    n_tiles = pl.cdiv(N, tile_n)
    n_pad = n_tiles * tile_n
    x_p = x if n_pad == N else jnp.pad(x, ((0, n_pad - N), (0, 0)))

    # Weights/biases: whole arrays, resident in VMEM (no blocking, no
    # double-buffering, fetched once for the whole call).
    vmem_whole = pl.BlockSpec(memory_space=pltpu.MemorySpace.VMEM)

    out = pl.pallas_call(
        _mlp_kernel,
        out_shape=jax.ShapeDtypeStruct((n_pad, out_pad), x.dtype),
        grid_spec=pltpu.PrefetchScalarGridSpec(
            num_scalar_prefetch=0,
            grid=(n_tiles,),
            in_specs=[
                pl.BlockSpec((tile_n, in_dim), lambda i: (i, 0)),  # x tile
                vmem_whole, vmem_whole,                            # layer 1
                vmem_whole, vmem_whole,                            # layer 2
                vmem_whole, vmem_whole,                            # layer 3
                vmem_whole, vmem_whole,                            # classifier
            ],
            out_specs=pl.BlockSpec((tile_n, out_pad), lambda i: (i, 0)),
        ),
        compiler_params=pltpu.CompilerParams(
            dimension_semantics=("parallel",)),
    )(x_p, w1, b1, w2, b2, w3, b3, wc_p, bc_p)

    return out[:N, :out_dim]


def init_params(key, in_dim, hid_dim, n_heads, fc_dim, output_dim, dtype=jnp.float32):
    """Deterministic synthetic parameters in (in_features, out_features) layout."""
    hid = n_heads * hid_dim
    ks = jax.random.split(key, 8)

    def lin(kw, kb, fan_in, fan_out):
        bound = 1.0 / jnp.sqrt(fan_in)
        w = jax.random.uniform(kw, (fan_in, fan_out), dtype, -bound, bound)
        b = jax.random.uniform(kb, (1, fan_out), dtype, -bound, bound)
        return w, b

    w1, b1 = lin(ks[0], ks[1], in_dim, hid)
    w2, b2 = lin(ks[2], ks[3], hid, hid)
    w3, b3 = lin(ks[4], ks[5], hid, fc_dim)
    wc, bc = lin(ks[6], ks[7], fc_dim, output_dim)
    return dict(w1=w1, b1=b1, w2=w2, b2=b2, w3=w3, b3=b3, wc=wc, bc=bc)


def reference_forward_f32(x, p):
    h = jnp.maximum(x @ p["w1"] + p["b1"], 0.0)
    h = jnp.maximum(h @ p["w2"] + p["b2"], 0.0)
    h = jnp.maximum(h @ p["w3"] + p["b3"], 0.0)
    return h @ p["wc"] + p["bc"]


def reference_forward_bf16(x, p):
    """Pure-JAX reference mirroring the kernel's bf16-input / f32-acc math."""
    bf16 = jnp.bfloat16

    def lin(a, w, b):
        return jnp.dot(a.astype(bf16), w.astype(bf16),
                       preferred_element_type=jnp.float32) + b.astype(jnp.float32)

    h = jnp.maximum(lin(x, p["w1"], p["b1"]), 0.0)
    h = jnp.maximum(lin(h, p["w2"], p["b2"]), 0.0)
    h = jnp.maximum(lin(h, p["w3"], p["b3"]), 0.0)
    return lin(h, p["wc"], p["bc"])


if __name__ == "__main__":
    # model_params: input_dim=16, hid_dim=32, n_heads=4, fc_dim=64, output_dim=8
    in_dim, hid_dim, n_heads, fc_dim, output_dim = 16, 32, 4, 64, 8
    N = 512  # number of nodes; pointwise MLP -> edge_index unused by forward

    key = jax.random.PRNGKey(0)
    kx, kp = jax.random.split(key)
    x = jax.random.normal(kx, (N, in_dim), jnp.float32)
    params = init_params(kp, in_dim, hid_dim, n_heads, fc_dim, output_dim)

    # TODO(synk): node_mask / dropout are training-only stochastic ops and are
    # identity in eval mode, so they are intentionally not implemented.
    logits = pointwise_mlp_forward(x, params, tile_n=256)
    logits = jax.block_until_ready(logits)
    assert logits.shape == (N, output_dim)

    # Exact-semantics check against a bf16-matched pure-JAX reference.
    ref_bf16 = reference_forward_bf16(x, params)
    assert jnp.allclose(logits, ref_bf16, atol=1e-2, rtol=1e-2), (
        float(jnp.max(jnp.abs(logits - ref_bf16))))

    # Loose check against the original f32 forward (bf16 mantissa loss only).
    ref_f32 = reference_forward_f32(x, params)
    assert jnp.allclose(logits, ref_f32, atol=5e-2, rtol=5e-2), (
        float(jnp.max(jnp.abs(logits - ref_f32))))

    print("KERNEL_OK")
</pallas_src>

<mosaic_0001>
module attributes {stable_mosaic.version = 11 : i64} {
  func.func @_mlp_kernel(%arg0: i32, %arg1: memref<256x16xf32, #tpu.memory_space<vmem>>, %arg2: memref<16x128xbf16, #tpu.memory_space<vmem>>, %arg3: memref<1x128xf32, #tpu.memory_space<vmem>>, %arg4: memref<128x128xbf16, #tpu.memory_space<vmem>>, %arg5: memref<1x128xf32, #tpu.memory_space<vmem>>, %arg6: memref<128x64xbf16, #tpu.memory_space<vmem>>, %arg7: memref<1x64xf32, #tpu.memory_space<vmem>>, %arg8: memref<64x128xbf16, #tpu.memory_space<vmem>>, %arg9: memref<1x128xf32, #tpu.memory_space<vmem>>, %arg10: memref<256x128xf32, #tpu.memory_space<vmem>>) attributes {dimension_semantics = [#tpu.dimension_semantics<parallel>], iteration_bounds = array<i64: 2>, scalar_prefetch = 0 : i64, scratch_operands = 0 : i64, tpu.core_type = #tpu.core_type<tc>, window_params = [{transform_indices = @transform_0, window_bounds = array<i64: 256, 16>}, {pipeline_mode = #tpu.pipeline_mode<synchronous>, transform_indices = @transform_1, window_bounds = array<i64: 16, 128>}, {pipeline_mode = #tpu.pipeline_mode<synchronous>, transform_indices = @transform_2, window_bounds = array<i64: 1, 128>}, {pipeline_mode = #tpu.pipeline_mode<synchronous>, transform_indices = @transform_3, window_bounds = array<i64: 128, 128>}, {pipeline_mode = #tpu.pipeline_mode<synchronous>, transform_indices = @transform_4, window_bounds = array<i64: 1, 128>}, {pipeline_mode = #tpu.pipeline_mode<synchronous>, transform_indices = @transform_5, window_bounds = array<i64: 128, 64>}, {pipeline_mode = #tpu.pipeline_mode<synchronous>, transform_indices = @transform_6, window_bounds = array<i64: 1, 64>}, {pipeline_mode = #tpu.pipeline_mode<synchronous>, transform_indices = @transform_7, window_bounds = array<i64: 64, 128>}, {pipeline_mode = #tpu.pipeline_mode<synchronous>, transform_indices = @transform_8, window_bounds = array<i64: 1, 128>}, {transform_indices = @transform_9, window_bounds = array<i64: 256, 128>}]} {
    %c0 = arith.constant 0 : index
    %c0_0 = arith.constant 0 : index
    %0 = vector.load %arg1[%c0, %c0_0] : memref<256x16xf32, #tpu.memory_space<vmem>>, vector<256x16xf32>
    %1 = arith.truncf %0 : vector<256x16xf32> to vector<256x16xbf16>
    %c0_1 = arith.constant 0 : index
    %c0_2 = arith.constant 0 : index
    %2 = vector.load %arg2[%c0_1, %c0_2] : memref<16x128xbf16, #tpu.memory_space<vmem>>, vector<16x128xbf16>
    %cst = arith.constant dense<0.000000e+00> : vector<256x128xf32>
    %3 = tpu.matmul %1, %2, %cst {dimension_numbers = #tpu.dot_dimension_numbers<[1], [0], [0], [1], [0, 0, 1, 1], [], []>} : vector<256x16xbf16>, vector<16x128xbf16>, vector<256x128xf32> -> vector<256x128xf32>
    %c0_3 = arith.constant 0 : index
    %c0_4 = arith.constant 0 : index
    %4 = vector.load %arg3[%c0_3, %c0_4] : memref<1x128xf32, #tpu.memory_space<vmem>>, vector<1x128xf32>
    %5 = vector.broadcast %4 : vector<1x128xf32> to vector<256x128xf32>
    %6 = arith.addf %3, %5 : vector<256x128xf32>
    %cst_5 = arith.constant 0.000000e+00 : f32
    %7 = vector.broadcast %cst_5 : f32 to vector<256x128xf32>
    %8 = arith.maximumf %6, %7 : vector<256x128xf32>
    %9 = arith.truncf %8 : vector<256x128xf32> to vector<256x128xbf16>
    %c0_6 = arith.constant 0 : index
    %c0_7 = arith.constant 0 : index
    %10 = vector.load %arg4[%c0_6, %c0_7] : memref<128x128xbf16, #tpu.memory_space<vmem>>, vector<128x128xbf16>
    %cst_8 = arith.constant dense<0.000000e+00> : vector<256x128xf32>
    %11 = tpu.matmul %9, %10, %cst_8 {dimension_numbers = #tpu.dot_dimension_numbers<[1], [0], [0], [1], [0, 0, 1, 1], [], []>} : vector<256x128xbf16>, vector<128x128xbf16>, vector<256x128xf32> -> vector<256x128xf32>
    %c0_9 = arith.constant 0 : index
    %c0_10 = arith.constant 0 : index
    %12 = vector.load %arg5[%c0_9, %c0_10] : memref<1x128xf32, #tpu.memory_space<vmem>>, vector<1x128xf32>
    %13 = vector.broadcast %12 : vector<1x128xf32> to vector<256x128xf32>
    %14 = arith.addf %11, %13 : vector<256x128xf32>
    %cst_11 = arith.constant 0.000000e+00 : f32
    %15 = vector.broadcast %cst_11 : f32 to vector<256x128xf32>
    %16 = arith.maximumf %14, %15 : vector<256x128xf32>
    %17 = arith.truncf %16 : vector<256x128xf32> to vector<256x128xbf16>
    %c0_12 = arith.constant 0 : index
    %c0_13 = arith.constant 0 : index
    %18 = vector.load %arg6[%c0_12, %c0_13] : memref<128x64xbf16, #tpu.memory_space<vmem>>, vector<128x64xbf16>
    %cst_14 = arith.constant dense<0.000000e+00> : vector<256x64xf32>
    %19 = tpu.matmul %17, %18, %cst_14 {dimension_numbers = #tpu.dot_dimension_numbers<[1], [0], [0], [1], [0, 0, 1, 1], [], []>} : vector<256x128xbf16>, vector<128x64xbf16>, vector<256x64xf32> -> vector<256x64xf32>
    %c0_15 = arith.constant 0 : index
    %c0_16 = arith.constant 0 : index
    %20 = vector.load %arg7[%c0_15, %c0_16] : memref<1x64xf32, #tpu.memory_space<vmem>>, vector<1x64xf32>
    %21 = vector.broadcast %20 : vector<1x64xf32> to vector<256x64xf32>
    %22 = arith.addf %19, %21 : vector<256x64xf32>
    %cst_17 = arith.constant 0.000000e+00 : f32
    %23 = vector.broadcast %cst_17 : f32 to vector<256x64xf32>
    %24 = arith.maximumf %22, %23 : vector<256x64xf32>
    %25 = arith.truncf %24 : vector<256x64xf32> to vector<256x64xbf16>
    %c0_18 = arith.constant 0 : index
    %c0_19 = arith.constant 0 : index
    %26 = vector.load %arg8[%c0_18, %c0_19] : memref<64x128xbf16, #tpu.memory_space<vmem>>, vector<64x128xbf16>
    %cst_20 = arith.constant dense<0.000000e+00> : vector<256x128xf32>
    %27 = tpu.matmul %25, %26, %cst_20 {dimension_numbers = #tpu.dot_dimension_numbers<[1], [0], [0], [1], [0, 0, 1, 1], [], []>} : vector<256x64xbf16>, vector<64x128xbf16>, vector<256x128xf32> -> vector<256x128xf32>
    %c0_21 = arith.constant 0 : index
    %c0_22 = arith.constant 0 : index
    %28 = vector.load %arg9[%c0_21, %c0_22] : memref<1x128xf32, #tpu.memory_space<vmem>>, vector<1x128xf32>
    %29 = vector.broadcast %28 : vector<1x128xf32> to vector<256x128xf32>
    %30 = arith.addf %27, %29 : vector<256x128xf32>
    %c0_23 = arith.constant 0 : index
    %c0_24 = arith.constant 0 : index
    %31 = vector.load %arg10[%c0_23, %c0_24] : memref<256x128xf32, #tpu.memory_space<vmem>>, vector<256x128xf32>
    tpu.vector_store %arg10[%c0_23, %c0_24], %30 {strides = array<i32>} : memref<256x128xf32, #tpu.memory_space<vmem>>, vector<256x128xf32>,
    return
  }
  func.func @transform_0(%arg0: i32) -> (i32, i32) {
    %c0_i32 = arith.constant 0 : i32
    %c0_i32_0 = arith.constant 0 : i32
    return %arg0, %c0_i32 : i32, i32
  }
  func.func @transform_1(%arg0: i32) -> (i32, i32) {
    %c0_i32 = arith.constant 0 : i32
    %c0_i32_0 = arith.constant 0 : i32
    %c0_i32_1 = arith.constant 0 : i32
    return %c0_i32, %c0_i32_0 : i32, i32
  }
  func.func @transform_2(%arg0: i32) -> (i32, i32) {
    %c0_i32 = arith.constant 0 : i32
    %c0_i32_0 = arith.constant 0 : i32
    %c0_i32_1 = arith.constant 0 : i32
    return %c0_i32, %c0_i32_0 : i32, i32
  }
  func.func @transform_3(%arg0: i32) -> (i32, i32) {
    %c0_i32 = arith.constant 0 : i32
    %c0_i32_0 = arith.constant 0 : i32
    %c0_i32_1 = arith.constant 0 : i32
    return %c0_i32, %c0_i32_0 : i32, i32
  }
  func.func @transform_4(%arg0: i32) -> (i32, i32) {
    %c0_i32 = arith.constant 0 : i32
    %c0_i32_0 = arith.constant 0 : i32
    %c0_i32_1 = arith.constant 0 : i32
    return %c0_i32, %c0_i32_0 : i32, i32
  }
  func.func @transform_5(%arg0: i32) -> (i32, i32) {
    %c0_i32 = arith.constant 0 : i32
    %c0_i32_0 = arith.constant 0 : i32
    %c0_i32_1 = arith.constant 0 : i32
    return %c0_i32, %c0_i32_0 : i32, i32
  }
  func.func @transform_6(%arg0: i32) -> (i32, i32) {
    %c0_i32 = arith.constant 0 : i32
    %c0_i32_0 = arith.constant 0 : i32
    %c0_i32_1 = arith.constant 0 : i32
    return %c0_i32, %c0_i32_0 : i32, i32
  }
  func.func @transform_7(%arg0: i32) -> (i32, i32) {
    %c0_i32 = arith.constant 0 : i32
    %c0_i32_0 = arith.constant 0 : i32
    %c0_i32_1 = arith.constant 0 : i32
    return %c0_i32, %c0_i32_0 : i32, i32
  }
  func.func @transform_8(%arg0: i32) -> (i32, i32) {
    %c0_i32 = arith.constant 0 : i32
    %c0_i32_0 = arith.constant 0 : i32
    %c0_i32_1 = arith.constant 0 : i32
    return %c0_i32, %c0_i32_0 : i32, i32
  }
  func.func @transform_9(%arg0: i32) -> (i32, i32) {
    %c0_i32 = arith.constant 0 : i32
    %c0_i32_0 = arith.constant 0 : i32
    return %arg0, %c0_i32 : i32, i32
  }
}

</mosaic_0001>

<bundles_post_ra>
// kernel: pointwise_mlp_forward.1
= control target key start
LH: loop header
LB: loop body
LE: loop exit
PB: predicated region body
PF: predicated region fallthrough
CT: control target
= control target key end

     0   :  { %s1973_s30 = smov 0   ;;  %s2308_s0 = inlined_call_operand.vmem [shape: f32[512,16], index: 0, kind: input, shape index: {}]   ;;  %s2309_s1 = inlined_call_operand.vmem [shape: bf16[16,128], index: 1, kind: input, shape index: {}]   ;;  %s2310_s2 = inlined_call_operand.vmem [shape: f32[1,128], index: 2, kind: input, shape index: {}]   ;;  %s2311_s3 = inlined_call_operand.vmem [shape: bf16[128,128], index: 3, kind: input, shape index: {}]   ;;  %s2312_s4 = inlined_call_operand.vmem [shape: f32[1,128], index: 4, kind: input, shape index: {}]   ;;  %s2313_s5 = inlined_call_operand.vmem [shape: bf16[128,64], index: 5, kind: input, shape index: {}]   ;;  %s2314_s6 = inlined_call_operand.vmem [shape: f32[1,64], index: 6, kind: input, shape index: {}]   ;;  %s2315_s7 = inlined_call_operand.vmem [shape: bf16[64,128], index: 7, kind: input, shape index: {}]   ;;  %s2316_s8 = inlined_call_operand.vmem [shape: f32[1,128], index: 8, kind: input, shape index: {}]   ;;  %s2317_s9 = inlined_call_operand.vmem [shape: f32[512,128], index: 9, kind: output, shape index: {}]  }
   0x1 LB: > { %s1555_s10 = sadd.s32 4294967295, %s1921_s30   ;;  %p1559_p0 = scmp.ge.s32.totalorder %s1921_s30, 1  ;;  %s1921_s30 = sphi %s1973_s30, %s19_s30  }
   0x2   : > { %p288_p1 = scmp.lt.s32.totalorder %s1921_s30, 3 }
   0x4   : > { %p289_p2 = pnand %p1559_p0, %p288_p1 }
   0x5   : > { %v1894_v0 = vld [vmem:[%s2309_s1] sm:$0xff] (!%p289_p2)   ;;  %s1560_s13 = sshll.u32 (!%p289_p2), %s1555_s10, 5  ;;  %v1896_v2 = vld [vmem:[%s2311_s3 + $0x8] sm:$0xff] (!%p289_p2)   ;;  %v1897_v3 = vld [vmem:[%s2311_s3 + $0x10] sm:$0xff] (!%p289_p2)   ;;  %vm400_vm0 = vcmask (!%p289_p2), 130048   ;;  %vm1257_vm1 = vcmask (!%p289_p2), 523264  }
   0x6   : > { %292 = sbr.rel (%p289_p2) target bundleno = 960 (0x3c0), region = 56  ;;  %p325_p3 = scmp.lt.s32.totalorder (!%p289_p2), %s1560_s13, 63  ;;  %1708 = vmatprep.subr.bf16.mxu0 (!%p289_p2), %v1894_v0  ;;  %v1895_v1 = vld [vmem:[%s2311_s3] sm:$0xff] (!%p289_p2)   ;;  %v1898_v13 = vld [vmem:[%s2311_s3 + $0x18] sm:$0xff] (!%p289_p2)   ;;  %v1900_v21 = vld [vmem:[%s2311_s3 + $0x28] sm:$0xff] (!%p289_p2)  }
   0x7   : > { %1709 = vmatpush3.bf16.msra.mxu0 (!%p289_p2), %v1894_v0  ;;  %1742 = vmatprep.subr.bf16.mxu1 (!%p289_p2), %v1895_v1  ;;  %v1899_v18 = vld [vmem:[%s2311_s3 + $0x20] sm:$0xff] (!%p289_p2)   ;;  %v1901_v55 = vld [vmem:[%s2311_s3 + $0x30] sm:$0xff] (!%p289_p2)   ;;  %v1902_v56 = vld [vmem:[%s2311_s3 + $0x38] sm:$0xff] (!%p289_p2)  }
   0x8   : > { %1743 = vmatpush3.bf16.msra.mxu1 (!%p289_p2), %v1895_v1  ;;  %v1903_v57 = vld [vmem:[%s2313_s5] sm:$0xff] (!%p289_p2)   ;;  %v1904_v58 = vld [vmem:[%s2313_s5 + $0x8] sm:$0xff] (!%p289_p2)   ;;  %v1905_v59 = vld [vmem:[%s2313_s5 + $0x10] sm:$0xff] (!%p289_p2)  }
   0x9   : > { %1744 = vmatprep.subr.bf16.mxu1 (!%p289_p2), %v1896_v2  ;;  %1790 = vmatprep.subr.bf16.mxu0 (!%p289_p2), %v1903_v57  ;;  %v1906_v60 = vld [vmem:[%s2313_s5 + $0x18] sm:$0xff] (!%p289_p2)   ;;  %v1907_v61 = vld [vmem:[%s2313_s5 + $0x20] sm:$0xff] (!%p289_p2)   ;;  %v1908_v62 = vld [vmem:[%s2313_s5 + $0x28] sm:$0xff] (!%p289_p2)  }
   0xa   : > { %v1909_v63 = vld [vmem:[%s2313_s5 + $0x30] sm:$0xff] (!%p289_p2)   ;;  %v2090_v0 = vld [vmem:[%s2310_s2] ss:$0 sm:$0xff] (!%p289_p2) }
   0xc   : > { %1745 = vmatpush3.bf16.msra.mxu1 (!%p289_p2), %v1896_v2 }
   0xd   : > { %s2319_s13 = smov (!%p325_p3, %s1560_s13), 63  ;;  %1746 = vmatprep.subr.bf16.mxu1 %v1897_v3 }
   0xe   : > { %s1561_s18 = sshll.u32 %s2319_s13, 3 }
   0xf   : > { %s1998_s21 = scalar_lea.vmem %s2308_s0, %s1561_s18  ;;  %s2239_s12 = scalar_lea.vmem %s2317_s9, %s1561_s18 }
  0x10   : > { %v337_v4 = vld [vmem:[%s1998_s21] sm:$0xff]  ;;  %v338_v5 = vld [vmem:[%s1998_s21 + $0x8] sm:$0xff]  ;;  %v339_v6 = vld [vmem:[%s1998_s21 + $0x10] sm:$0xff]  ;;  %1747 = vmatpush3.bf16.msra.mxu1 %v1897_v3 }
  0x11   : > { %v369_v7 = vpack.c.bf16 %v338_v5, %v337_v4  ;;  %v340_v8 = vld [vmem:[%s1998_s21 + $0x18] sm:$0xff]  ;;  %v341_v9 = vld [vmem:[%s1998_s21 + $0x20] sm:$0xff]  ;;  %v342_v10 = vld [vmem:[%s1998_s21 + $0x28] sm:$0xff]  ;;  %1748 = vmatprep.subr.bf16.mxu1 %v1898_v13 }
  0x12   : > { %v370_v11 = vpack.c.bf16 %v340_v8, %v339_v6  ;;  %v371_v12 = vpack.c.bf16 %v342_v10, %v341_v9  ;;  %v343_v14 = vld [vmem:[%s1998_s21 + $0x30] sm:$0xff]  ;;  %v344_v15 = vld [vmem:[%s1998_s21 + $0x38] sm:$0xff]  ;;  %v345_v16 = vld [vmem:[%s1998_s21 + $0x40] sm:$0xff] }
  0x13   : > { %1710 = vmatprep.mubr.msk.bf16.mxu0 %vm400_vm0, %v369_v7  ;;  %v346_v17 = vld [vmem:[%s1998_s21 + $0x48] sm:$0xff]  ;;  %v372_v19 = vpack.c.bf16 %v344_v15, %v343_v14  ;;  %v347_v22 = vld [vmem:[%s1998_s21 + $0x50] sm:$0xff]  ;;  %v348_v23 = vld [vmem:[%s1998_s21 + $0x58] sm:$0xff] }
  0x14   : > { %1711 = vmatmul.mubr.msk.bf16.vlgmr.msra.gmra.mrb[0].mxu0 %vm400_vm0, %v370_v11  ;;  %v373_v20 = vpack.c.bf16 %v346_v17, %v345_v16  ;;  %1749 = vmatpush3.bf16.msra.mxu1 %v1898_v13  ;;  %v349_v24 = vld [vmem:[%s1998_s21 + $0x60] sm:$0xff]  ;;  %v350_v25 = vld [vmem:[%s1998_s21 + $0x68] sm:$0xff]  ;;  %v374_v26 = vpack.c.bf16 %v348_v23, %v347_v22  ;;  %v351_v28 = vld [vmem:[%s1998_s21 + $0x70] sm:$0xff] }
  0x15   : > { %1714 = vmatprep.mubr.msk.bf16.mxu0 %vm400_vm0, %v371_v12  ;;  %1750 = vmatprep.subr.bf16.mxu1 %v1899_v18  ;;  %v375_v27 = vpack.c.bf16 %v350_v25, %v349_v24  ;;  %v352_v29 = vld [vmem:[%s1998_s21 + $0x78] sm:$0xff]  ;;  %v353_v30 = vld [vmem:[%s1998_s21 + $0x80] sm:$0xff]  ;;  %v354_v31 = vld [vmem:[%s1998_s21 + $0x88] sm:$0xff] }
  0x16   : > { %v376_v32 = vpack.c.bf16 %v352_v29, %v351_v28  ;;  %v377_v33 = vpack.c.bf16 %v354_v31, %v353_v30  ;;  %v355_v34 = vld [vmem:[%s1998_s21 + $0x90] sm:$0xff]  ;;  %v356_v35 = vld [vmem:[%s1998_s21 + $0x98] sm:$0xff]  ;;  %v357_v36 = vld [vmem:[%s1998_s21 + $0xa0] sm:$0xff]  ;;  %1791 = vmatpush3.bf16.msra.mxu0 %v1903_v57 }
  0x17   : > { %v358_v37 = vld [vmem:[%s1998_s21 + $0xa8] sm:$0xff]  ;;  %v378_v38 = vpack.c.bf16 %v356_v35, %v355_v34  ;;  %v359_v40 = vld [vmem:[%s1998_s21 + $0xb0] sm:$0xff]  ;;  %v360_v41 = vld [vmem:[%s1998_s21 + $0xb8] sm:$0xff]  ;;  %1792 = vmatprep.subr.bf16.mxu0 %v1904_v58 }
  0x18   : > { %1751 = vmatpush3.bf16.msra.mxu1 %v1899_v18  ;;  %v379_v39 = vpack.c.bf16 %v358_v37, %v357_v36  ;;  %v361_v42 = vld [vmem:[%s1998_s21 + $0xc0] sm:$0xff]  ;;  %v362_v43 = vld [vmem:[%s1998_s21 + $0xc8] sm:$0xff]  ;;  %v380_v44 = vpack.c.bf16 %v360_v41, %v359_v40  ;;  %v363_v46 = vld [vmem:[%s1998_s21 + $0xd0] sm:$0xff] }
  0x19   : > { %1752 = vmatprep.subr.bf16.mxu1 %v1900_v21  ;;  %v381_v45 = vpack.c.bf16 %v362_v43, %v361_v42  ;;  %v364_v47 = vld [vmem:[%s1998_s21 + $0xd8] sm:$0xff]  ;;  %v365_v48 = vld [vmem:[%s1998_s21 + $0xe0] sm:$0xff]  ;;  %v366_v49 = vld [vmem:[%s1998_s21 + $0xe8] sm:$0xff] }
  0x1a   : > { %v382_v50 = vpack.c.bf16 %v364_v47, %v363_v46  ;;  %v383_v51 = vpack.c.bf16 %v366_v49, %v365_v48  ;;  %v367_v52 = vld [vmem:[%s1998_s21 + $0xf0] sm:$0xff]  ;;  %v368_v53 = vld [vmem:[%s1998_s21 + $0xf8] sm:$0xff]  ;;  %1793 = vmatpush3.bf16.msra.mxu0 %v1904_v58 }
  0x1b   : > { %v384_v54 = vpack.c.bf16 %v368_v53, %v367_v52  ;;  %1794 = vmatprep.subr.bf16.mxu0 %v1905_v59 }
  0x1c   : > { %1715 = vmatmul.mubr.msk.bf16.gmra.mrb[4].mxu0 %vm400_vm0, %v372_v19  ;;  %1753 = vmatpush3.bf16.msra.mxu1 %v1900_v21 }
  0x1d   : > { %1718 = vmatprep.mubr.msk.bf16.mxu0 %vm400_vm0, %v373_v20  ;;  %1754 = vmatprep.subr.bf16.mxu1 %v1901_v55 }
  0x1e   : > { %1795 = vmatpush3.bf16.msra.mxu0 %v1905_v59 }
  0x1f   : > { %1796 = vmatprep.subr.bf16.mxu0 %v1906_v60 }
  0x20   : > { %1755 = vmatpush3.bf16.msra.mxu1 %v1901_v55 }
  0x21   : > { %1756 = vmatprep.subr.bf16.mxu1 %v1902_v56 }
  0x22   : > { %1797 = vmatpush3.bf16.msra.mxu0 %v1906_v60 }
  0x23   : > { %1798 = vmatprep.subr.bf16.mxu0 %v1907_v61 }
  0x24   : > { %1719 = vmatmul.mubr.msk.bf16.gmra.mrb[8].mxu0 %vm400_vm0, %v374_v26  ;;  %1757 = vmatpush3.bf16.msra.mxu1 %v1902_v56 }
  0x25   : > { %1722 = vmatprep.mubr.msk.bf16.mxu0 %vm400_vm0, %v375_v27 }
  0x26   : > { %1799 = vmatpush3.bf16.msra.mxu0 %v1907_v61 }
  0x27   : > { %1800 = vmatprep.subr.bf16.mxu0 %v1908_v62 }
  0x2a   : > { %1801 = vmatpush3.bf16.msra.mxu0 %v1908_v62 }
  0x2b   : > { %1802 = vmatprep.subr.bf16.mxu0 %v1909_v63 }
  0x2c   : > { %1723 = vmatmul.mubr.msk.bf16.gmra.mrb[12].mxu0 %vm400_vm0, %v376_v32 }
  0x2d   : > { %1726 = vmatprep.mubr.msk.bf16.mxu0 %vm400_vm0, %v377_v33 }
  0x2e   : > { %1803 = vmatpush3.bf16.msra.mxu0 %v1909_v63 }
  0x34   : > { %1727 = vmatmul.mubr.msk.bf16.gmra.mrb[16].mxu0 %vm400_vm0, %v378_v38 }
  0x35   : > { %1730 = vmatprep.mubr.msk.bf16.mxu0 %vm400_vm0, %v379_v39 }
  0x3c   : > { %1731 = vmatmul.mubr.msk.bf16.gmra.mrb[20].mxu0 %vm400_vm0, %v380_v44 }
  0x3d   : > { %1734 = vmatprep.mubr.msk.bf16.mxu0 %vm400_vm0, %v381_v45 }
  0x44   : > { %1735 = vmatmul.mubr.msk.bf16.gmra.mrb[24].mxu0 %vm400_vm0, %v382_v50 }
  0x45   : > { %1738 = vmatprep.mubr.msk.bf16.mxu0 %vm400_vm0, %v383_v51 }
  0x4c   : > { %1739 = vmatmul.mubr.msk.bf16.gmra.mrb[28].mxu0 %vm400_vm0, %v384_v54 }
  0xe7   : > { %v1712_v1 = vpop.f32.mrb[0].mxu0 }
  0xe8   : > { %v492_v2 = vadd.f32 %v1712_v1, %v2090_v0  ;;  %v483_v3 = vpop.f32.mrb[1].mxu0 }
  0xe9   : > { %v484_v4 = vadd.f32 %v2090_v0, %v483_v3  ;;  %v1713_v5 = vpop.f32.mrb[2].mxu0 }
  0xea   : > { %v495_v6 = vadd.f32 %v1713_v5, %v2090_v0  ;;  %v486_v7 = vpop.f32.mrb[3].mxu0  ;;  %v612_v9 = vmax.f32 %v492_v2, 0.0 }
  0xeb   : > { %v487_v8 = vadd.f32 %v2090_v0, %v486_v7  ;;  %v610_v11 = vmax.f32 %v484_v4, 0.0 }
  0xec   : > { %v613_v10 = vmax.f32 %v495_v6, 0.0 }
  0xed   : > { %v611_v12 = vmax.f32 %v487_v8, 0.0 }
  0xee   : > { %v643_v13 = vpack.c.bf16 %v613_v10, %v612_v9 }
  0xef   : > { %v1716_v14 = vpop.f32.mrb[4].mxu0  ;;  %v642_v15 = vpack.c.bf16 %v611_v12, %v610_v11 }
  0xf0   : > { %v508_v16 = vadd.f32 %v1716_v14, %v2090_v0  ;;  %v499_v17 = vpop.f32.mrb[5].mxu0 }
  0xf1   : > { %v500_v18 = vadd.f32 %v2090_v0, %v499_v17  ;;  %v1717_v19 = vpop.f32.mrb[6].mxu0  ;;  %1758 = vmatprep.mubr.bf16.mxu1 %v642_v15 }
  0xf2   : > { %v511_v20 = vadd.f32 %v1717_v19, %v2090_v0  ;;  %v502_v21 = vpop.f32.mrb[7].mxu0  ;;  %1759 = vmatmul.mubr.bf16.vlgmr.msra.gmra.mrb[0].mxu1 %v643_v13  ;;  %v616_v23 = vmax.f32 %v508_v16, 0.0 }
  0xf3   : > { %v503_v22 = vadd.f32 %v2090_v0, %v502_v21  ;;  %v614_v25 = vmax.f32 %v500_v18, 0.0 }
  0xf4   : > { %v617_v24 = vmax.f32 %v511_v20, 0.0 }
  0xf5   : > { %v615_v26 = vmax.f32 %v503_v22, 0.0 }
  0xf6   : > { %v645_v27 = vpack.c.bf16 %v617_v24, %v616_v23 }
  0xf7   : > { %v644_v28 = vpack.c.bf16 %v615_v26, %v614_v25  ;;  %v1720_v29 = vpop.f32.mrb[8].mxu0 }
  0xf8   : > { %v524_v30 = vadd.f32 %v1720_v29, %v2090_v0  ;;  %v515_v31 = vpop.f32.mrb[9].mxu0 }
  0xf9   : > { %v516_v32 = vadd.f32 %v2090_v0, %v515_v31  ;;  %v1721_v33 = vpop.f32.mrb[10].mxu0  ;;  %1762 = vmatprep.mubr.bf16.mxu1 %v644_v28 }
  0xfa   : > { %v527_v34 = vadd.f32 %v1721_v33, %v2090_v0  ;;  %v518_v35 = vpop.f32.mrb[11].mxu0  ;;  %1763 = vmatmul.mubr.bf16.gmra.mrb[4].mxu1 %v645_v27  ;;  %v620_v37 = vmax.f32 %v524_v30, 0.0 }
  0xfb   : > { %v519_v36 = vadd.f32 %v2090_v0, %v518_v35  ;;  %v618_v39 = vmax.f32 %v516_v32, 0.0 }
  0xfc   : > { %v621_v38 = vmax.f32 %v527_v34, 0.0 }
  0xfd   : > { %v619_v40 = vmax.f32 %v519_v36, 0.0 }
  0xfe   : > { %v647_v41 = vpack.c.bf16 %v621_v38, %v620_v37 }
  0xff   : > { %v646_v42 = vpack.c.bf16 %v619_v40, %v618_v39  ;;  %v1724_v43 = vpop.f32.mrb[12].mxu0 }
 0x100   : > { %v540_v44 = vadd.f32 %v1724_v43, %v2090_v0  ;;  %v531_v45 = vpop.f32.mrb[13].mxu0 }
 0x101   : > { %v532_v46 = vadd.f32 %v2090_v0, %v531_v45  ;;  %v1725_v47 = vpop.f32.mrb[14].mxu0  ;;  %1766 = vmatprep.mubr.bf16.mxu1 %v646_v42 }
 0x102   : > { %v543_v48 = vadd.f32 %v1725_v47, %v2090_v0  ;;  %v534_v49 = vpop.f32.mrb[15].mxu0  ;;  %1767 = vmatmul.mubr.bf16.gmra.mrb[8].mxu1 %v647_v41  ;;  %v624_v51 = vmax.f32 %v540_v44, 0.0 }
 0x103   : > { %v535_v50 = vadd.f32 %v2090_v0, %v534_v49  ;;  %v622_v53 = vmax.f32 %v532_v46, 0.0 }
 0x104   : > { %v625_v52 = vmax.f32 %v543_v48, 0.0 }
 0x105   : > { %v623_v54 = vmax.f32 %v535_v50, 0.0  ;;  %v1910_v50 = vld [vmem:[%s2313_s5 + $0x38] sm:$0xff]  }
 0x106   : > { %v649_v55 = vpack.c.bf16 %v625_v52, %v624_v51  ;;  %1804 = vmatprep.subr.bf16.mxu0 %v1910_v50  ;;  %v1911_v51 = vld [vmem:[%s2315_s7] sm:$0xff]   ;;  %v1913_v52 = vld [vmem:[%s2315_s7 + $0x10] sm:$0xff]  }
 0x107   : > { %v648_v56 = vpack.c.bf16 %v623_v54, %v622_v53  ;;  %v1728_v57 = vpop.f32.mrb[16].mxu0  ;;  %1805 = vmatpush3.bf16.msra.mxu0 %v1910_v50  ;;  %1878 = vmatprep.subr.bf16.mxu1 %v1911_v51  ;;  %v2139_v53 = vld [vmem:[%s2312_s4] ss:$0 sm:$0xff] }
 0x108   : > { %v556_v58 = vadd.f32 %v1728_v57, %v2090_v0  ;;  %v547_v59 = vpop.f32.mrb[17].mxu0  ;;  %1838 = vmatprep.subr.bf16.mxu0 %v1911_v51  ;;  %1882 = vmatpush3.bf16.msra.mxu1 %v1911_v51 }
 0x109   : > { %v548_v60 = vadd.f32 %v2090_v0, %v547_v59  ;;  %v1729_v61 = vpop.f32.mrb[18].mxu0  ;;  %1770 = vmatprep.mubr.bf16.mxu1 %v648_v56 }
 0x10a   : > { %v559_v62 = vadd.f32 %v1729_v61, %v2090_v0  ;;  %v550_v63 = vpop.f32.mrb[19].mxu0  ;;  %1771 = vmatmul.mubr.bf16.gmra.mrb[12].mxu1 %v649_v55  ;;  %v628_v2 = vmax.f32 %v556_v58, 0.0 }
 0x10b   : > { %v551_v1 = vadd.f32 %v2090_v0, %v550_v63  ;;  %v626_v4 = vmax.f32 %v548_v60, 0.0 }
 0x10c   : > { %v629_v3 = vmax.f32 %v559_v62, 0.0 }
 0x10d   : > { %v627_v5 = vmax.f32 %v551_v1, 0.0 }
 0x10e   : > { %v651_v6 = vpack.c.bf16 %v629_v3, %v628_v2 }
 0x10f   : > { %v650_v7 = vpack.c.bf16 %v627_v5, %v626_v4  ;;  %v1732_v8 = vpop.f32.mrb[20].mxu0 }
 0x110   : > { %v572_v9 = vadd.f32 %v1732_v8, %v2090_v0  ;;  %v563_v10 = vpop.f32.mrb[21].mxu0 }
 0x111   : > { %v564_v11 = vadd.f32 %v2090_v0, %v563_v10  ;;  %v1733_v12 = vpop.f32.mrb[22].mxu0  ;;  %1774 = vmatprep.mubr.bf16.mxu1 %v650_v7 }
 0x112   : > { %v575_v13 = vadd.f32 %v1733_v12, %v2090_v0  ;;  %v566_v14 = vpop.f32.mrb[23].mxu0  ;;  %1775 = vmatmul.mubr.bf16.gmra.mrb[16].mxu1 %v651_v6  ;;  %v632_v16 = vmax.f32 %v572_v9, 0.0 }
 0x113   : > { %v567_v15 = vadd.f32 %v2090_v0, %v566_v14  ;;  %v630_v18 = vmax.f32 %v564_v11, 0.0 }
 0x114   : > { %v633_v17 = vmax.f32 %v575_v13, 0.0 }
 0x115   : > { %v631_v19 = vmax.f32 %v567_v15, 0.0 }
 0x116   : > { %v653_v20 = vpack.c.bf16 %v633_v17, %v632_v16 }
 0x117   : > { %v652_v21 = vpack.c.bf16 %v631_v19, %v630_v18  ;;  %v1736_v22 = vpop.f32.mrb[24].mxu0 }
 0x118   : > { %v588_v23 = vadd.f32 %v1736_v22, %v2090_v0  ;;  %v579_v24 = vpop.f32.mrb[25].mxu0 }
 0x119   : > { %v580_v25 = vadd.f32 %v2090_v0, %v579_v24  ;;  %v1737_v26 = vpop.f32.mrb[26].mxu0  ;;  %1778 = vmatprep.mubr.bf16.mxu1 %v652_v21 }
 0x11a   : > { %v591_v27 = vadd.f32 %v1737_v26, %v2090_v0  ;;  %v582_v28 = vpop.f32.mrb[27].mxu0  ;;  %1779 = vmatmul.mubr.bf16.gmra.mrb[20].mxu1 %v653_v20  ;;  %v636_v30 = vmax.f32 %v588_v23, 0.0 }
 0x11b   : > { %v583_v29 = vadd.f32 %v2090_v0, %v582_v28  ;;  %v634_v32 = vmax.f32 %v580_v25, 0.0 }
 0x11c   : > { %v637_v31 = vmax.f32 %v591_v27, 0.0 }
 0x11d   : > { %v635_v33 = vmax.f32 %v583_v29, 0.0 }
 0x11e   : > { %v655_v34 = vpack.c.bf16 %v637_v31, %v636_v30 }
 0x11f   : > { %v654_v35 = vpack.c.bf16 %v635_v33, %v634_v32  ;;  %v1740_v36 = vpop.f32.mrb[28].mxu0 }
 0x120   : > { %v604_v37 = vadd.f32 %v1740_v36, %v2090_v0  ;;  %v595_v38 = vpop.f32.mrb[29].mxu0 }
 0x121   : > { %v596_v39 = vadd.f32 %v2090_v0, %v595_v38  ;;  %v1741_v40 = vpop.f32.mrb[30].mxu0  ;;  %1782 = vmatprep.mubr.bf16.mxu1 %v654_v35 }
 0x122   : > { %v607_v41 = vadd.f32 %v1741_v40, %v2090_v0  ;;  %v598_v42 = vpop.f32.mrb[31].mxu0  ;;  %1783 = vmatmul.mubr.bf16.gmra.mrb[24].mxu1 %v655_v34  ;;  %v640_v44 = vmax.f32 %v604_v37, 0.0 }
 0x123   : > { %v599_v43 = vadd.f32 %v2090_v0, %v598_v42  ;;  %v638_v46 = vmax.f32 %v596_v39, 0.0  ;;  %v1912_v0 = vld [vmem:[%s2315_s7 + $0x8] sm:$0xff]  }
 0x124   : > { %v641_v45 = vmax.f32 %v607_v41, 0.0  ;;  %1879 = vmatprep.subr.bf16.mxu1 %v1912_v0 }
 0x125   : > { %v639_v47 = vmax.f32 %v599_v43, 0.0  ;;  %1883 = vmatpush3.bf16.msra.mxu1 %v1912_v0 }
 0x126   : > { %v657_v48 = vpack.c.bf16 %v641_v45, %v640_v44  ;;  %1880 = vmatprep.subr.bf16.mxu1 %v1913_v52 }
 0x127   : > { %v656_v49 = vpack.c.bf16 %v639_v47, %v638_v46 }
 0x129   : > { %1786 = vmatprep.mubr.bf16.mxu1 %v656_v49  ;;  %1884 = vmatpush3.bf16.msra.mxu1 %v1913_v52 }
 0x12a   : > { %1787 = vmatmul.mubr.bf16.gmra.mrb[28].mxu1 %v657_v48 }
 0x1c5   : > { %v1760_v54 = vpop.f32.mrb[0].mxu1 }
 0x1c6   : > { %v772_v55 = vadd.f32 %v1760_v54, %v2139_v53  ;;  %v763_v56 = vpop.f32.mrb[1].mxu1 }
 0x1c7   : > { %v764_v57 = vadd.f32 %v2139_v53, %v763_v56  ;;  %v1761_v58 = vpop.f32.mrb[2].mxu1 }
 0x1c8   : > { %v775_v59 = vadd.f32 %v1761_v58, %v2139_v53  ;;  %v766_v60 = vpop.f32.mrb[3].mxu1  ;;  %v892_v62 = vmax.f32 %v772_v55, 0.0 }
 0x1c9   : > { %v767_v61 = vadd.f32 %v2139_v53, %v766_v60  ;;  %v890_v1 = vmax.f32 %v764_v57, 0.0 }
 0x1ca   : > { %v893_v63 = vmax.f32 %v775_v59, 0.0 }
 0x1cb   : > { %v891_v2 = vmax.f32 %v767_v61, 0.0 }
 0x1cc   : > { %v923_v3 = vpack.c.bf16 %v893_v63, %v892_v62 }
 0x1cd   : > { %v922_v4 = vpack.c.bf16 %v891_v2, %v890_v1  ;;  %v1764_v5 = vpop.f32.mrb[4].mxu1 }
 0x1ce   : > { %v788_v6 = vadd.f32 %v1764_v5, %v2139_v53  ;;  %v779_v7 = vpop.f32.mrb[5].mxu1 }
 0x1cf   : > { %v780_v8 = vadd.f32 %v2139_v53, %v779_v7  ;;  %v1765_v9 = vpop.f32.mrb[6].mxu1  ;;  %1806 = vmatprep.mubr.bf16.mxu0 %v922_v4 }
 0x1d0   : > { %v791_v10 = vadd.f32 %v1765_v9, %v2139_v53  ;;  %v782_v11 = vpop.f32.mrb[7].mxu1  ;;  %1807 = vmatmul.mubr.bf16.vlgmr.msra.gmra.mrb[32].mxu0 %v923_v3  ;;  %v896_v13 = vmax.f32 %v788_v6, 0.0 }
 0x1d1   : > { %v783_v12 = vadd.f32 %v2139_v53, %v782_v11  ;;  %1839 = vmatpush3.bf16.msra.mxu0 %v1911_v51  ;;  %v894_v15 = vmax.f32 %v780_v8, 0.0 }
 0x1d2   : > { %v897_v14 = vmax.f32 %v791_v10, 0.0  ;;  %1840 = vmatprep.subr.bf16.mxu0 %v1912_v0 }
 0x1d3   : > { %v895_v16 = vmax.f32 %v783_v12, 0.0 }
 0x1d4   : > { %v925_v17 = vpack.c.bf16 %v897_v14, %v896_v13 }
 0x1d5   : > { %v924_v18 = vpack.c.bf16 %v895_v16, %v894_v15  ;;  %v1768_v19 = vpop.f32.mrb[8].mxu1  ;;  %1841 = vmatpush3.bf16.msra.mxu0 %v1912_v0 }
 0x1d6   : > { %v804_v20 = vadd.f32 %v1768_v19, %v2139_v53  ;;  %v795_v21 = vpop.f32.mrb[9].mxu1  ;;  %1842 = vmatprep.subr.bf16.mxu0 %v1913_v52 }
 0x1d7   : > { %v796_v22 = vadd.f32 %v2139_v53, %v795_v21  ;;  %v1769_v23 = vpop.f32.mrb[10].mxu1  ;;  %1810 = vmatprep.mubr.bf16.mxu0 %v924_v18 }
 0x1d8   : > { %v807_v24 = vadd.f32 %v1769_v23, %v2139_v53  ;;  %v798_v25 = vpop.f32.mrb[11].mxu1  ;;  %1811 = vmatmul.mubr.bf16.gmra.mrb[36].mxu0 %v925_v17  ;;  %v900_v27 = vmax.f32 %v804_v20, 0.0 }
 0x1d9   : > { %v799_v26 = vadd.f32 %v2139_v53, %v798_v25  ;;  %1843 = vmatpush3.bf16.msra.mxu0 %v1913_v52  ;;  %v898_v29 = vmax.f32 %v796_v22, 0.0 }
 0x1da   : > { %v901_v28 = vmax.f32 %v807_v24, 0.0 }
 0x1db   : > { %v899_v30 = vmax.f32 %v799_v26, 0.0 }
 0x1dc   : > { %v927_v31 = vpack.c.bf16 %v901_v28, %v900_v27 }
 0x1dd   : > { %v926_v32 = vpack.c.bf16 %v899_v30, %v898_v29  ;;  %v1772_v33 = vpop.f32.mrb[12].mxu1 }
 0x1de   : > { %v820_v34 = vadd.f32 %v1772_v33, %v2139_v53  ;;  %v811_v35 = vpop.f32.mrb[13].mxu1 }
 0x1df   : > { %v812_v36 = vadd.f32 %v2139_v53, %v811_v35  ;;  %v1773_v37 = vpop.f32.mrb[14].mxu1  ;;  %1814 = vmatprep.mubr.bf16.mxu0 %v926_v32 }
 0x1e0   : > { %v823_v38 = vadd.f32 %v1773_v37, %v2139_v53  ;;  %v814_v39 = vpop.f32.mrb[15].mxu1  ;;  %1815 = vmatmul.mubr.bf16.gmra.mrb[40].mxu0 %v927_v31  ;;  %v904_v41 = vmax.f32 %v820_v34, 0.0 }
 0x1e1   : > { %v815_v40 = vadd.f32 %v2139_v53, %v814_v39  ;;  %v902_v43 = vmax.f32 %v812_v36, 0.0 }
 0x1e2   : > { %v905_v42 = vmax.f32 %v823_v38, 0.0 }
 0x1e3   : > { %v903_v44 = vmax.f32 %v815_v40, 0.0  ;;  %v1914_v40 = vld [vmem:[%s2315_s7 + $0x18] sm:$0xff]  }
 0x1e4   : > { %v929_v45 = vpack.c.bf16 %v905_v42, %v904_v41  ;;  %1881 = vmatprep.subr.bf16.mxu1 %v1914_v40  ;;  %1844 = vmatprep.subr.bf16.mxu0 %v1914_v40 }
 0x1e5   : > { %v928_v46 = vpack.c.bf16 %v903_v44, %v902_v43  ;;  %v1776_v47 = vpop.f32.mrb[16].mxu1  ;;  %1885 = vmatpush3.bf16.msra.mxu1 %v1914_v40  ;;  %1845 = vmatpush3.bf16.msra.mxu0 %v1914_v40 }
 0x1e6   : > { %v836_v48 = vadd.f32 %v1776_v47, %v2139_v53  ;;  %v827_v49 = vpop.f32.mrb[17].mxu1 }
 0x1e7   : > { %v828_v50 = vadd.f32 %v2139_v53, %v827_v49  ;;  %v1777_v51 = vpop.f32.mrb[18].mxu1  ;;  %1818 = vmatprep.mubr.bf16.mxu0 %v928_v46 }
 0x1e8   : > { %v839_v0 = vadd.f32 %v1777_v51, %v2139_v53  ;;  %v830_v52 = vpop.f32.mrb[19].mxu1  ;;  %1819 = vmatmul.mubr.bf16.gmra.mrb[44].mxu0 %v929_v45  ;;  %v908_v55 = vmax.f32 %v836_v48, 0.0 }
 0x1e9   : > { %v831_v54 = vadd.f32 %v2139_v53, %v830_v52  ;;  %v906_v57 = vmax.f32 %v828_v50, 0.0 }
 0x1ea   : > { %v909_v56 = vmax.f32 %v839_v0, 0.0 }
 0x1eb   : > { %v907_v58 = vmax.f32 %v831_v54, 0.0 }
 0x1ec   : > { %v931_v59 = vpack.c.bf16 %v909_v56, %v908_v55 }
 0x1ed   : > { %v930_v60 = vpack.c.bf16 %v907_v58, %v906_v57  ;;  %v1780_v61 = vpop.f32.mrb[20].mxu1 }
 0x1ee   : > { %v852_v62 = vadd.f32 %v1780_v61, %v2139_v53  ;;  %v843_v63 = vpop.f32.mrb[21].mxu1 }
 0x1ef   : > { %v844_v1 = vadd.f32 %v2139_v53, %v843_v63  ;;  %v1781_v2 = vpop.f32.mrb[22].mxu1  ;;  %1822 = vmatprep.mubr.bf16.mxu0 %v930_v60 }
 0x1f0   : > { %v855_v3 = vadd.f32 %v1781_v2, %v2139_v53  ;;  %v846_v4 = vpop.f32.mrb[23].mxu1  ;;  %1823 = vmatmul.mubr.bf16.gmra.mrb[48].mxu0 %v931_v59  ;;  %v912_v6 = vmax.f32 %v852_v62, 0.0 }
 0x1f1   : > { %v847_v5 = vadd.f32 %v2139_v53, %v846_v4  ;;  %v910_v8 = vmax.f32 %v844_v1, 0.0 }
 0x1f2   : > { %v913_v7 = vmax.f32 %v855_v3, 0.0 }
 0x1f3   : > { %v911_v9 = vmax.f32 %v847_v5, 0.0 }
 0x1f4   : > { %v933_v10 = vpack.c.bf16 %v913_v7, %v912_v6 }
 0x1f5   : > { %v932_v11 = vpack.c.bf16 %v911_v9, %v910_v8  ;;  %v1784_v12 = vpop.f32.mrb[24].mxu1 }
 0x1f6   : > { %v868_v13 = vadd.f32 %v1784_v12, %v2139_v53  ;;  %v859_v14 = vpop.f32.mrb[25].mxu1 }
 0x1f7   : > { %v860_v15 = vadd.f32 %v2139_v53, %v859_v14  ;;  %v1785_v16 = vpop.f32.mrb[26].mxu1  ;;  %1826 = vmatprep.mubr.bf16.mxu0 %v932_v11 }
 0x1f8   : > { %v871_v17 = vadd.f32 %v1785_v16, %v2139_v53  ;;  %v862_v18 = vpop.f32.mrb[27].mxu1  ;;  %1827 = vmatmul.mubr.bf16.gmra.mrb[52].mxu0 %v933_v10  ;;  %v916_v20 = vmax.f32 %v868_v13, 0.0 }
 0x1f9   : > { %v863_v19 = vadd.f32 %v2139_v53, %v862_v18  ;;  %v914_v22 = vmax.f32 %v860_v15, 0.0 }
 0x1fa   : > { %v917_v21 = vmax.f32 %v871_v17, 0.0 }
 0x1fb   : > { %v915_v23 = vmax.f32 %v863_v19, 0.0 }
 0x1fc   : > { %v935_v24 = vpack.c.bf16 %v917_v21, %v916_v20 }
 0x1fd   : > { %v934_v25 = vpack.c.bf16 %v915_v23, %v914_v22  ;;  %v1788_v26 = vpop.f32.mrb[28].mxu1 }
 0x1fe   : > { %v884_v27 = vadd.f32 %v1788_v26, %v2139_v53  ;;  %v875_v28 = vpop.f32.mrb[29].mxu1 }
 0x1ff   : > { %v876_v29 = vadd.f32 %v2139_v53, %v875_v28  ;;  %v1789_v30 = vpop.f32.mrb[30].mxu1  ;;  %1830 = vmatprep.mubr.bf16.mxu0 %v934_v25 }
 0x200   : > { %v887_v31 = vadd.f32 %v1789_v30, %v2139_v53  ;;  %v878_v32 = vpop.f32.mrb[31].mxu1  ;;  %1831 = vmatmul.mubr.bf16.gmra.mrb[56].mxu0 %v935_v24  ;;  %v920_v34 = vmax.f32 %v884_v27, 0.0 }
 0x201   : > { %v879_v33 = vadd.f32 %v2139_v53, %v878_v32  ;;  %v918_v36 = vmax.f32 %v876_v29, 0.0  ;;  %v2179_v53 = vld [vmem:[%s2314_s6] ss:$0 sm:$0xff] }
 0x202   : > { %v921_v35 = vmax.f32 %v887_v31, 0.0 }
 0x203   : > { %v919_v37 = vmax.f32 %v879_v33, 0.0 }
 0x204   : > { %v937_v38 = vpack.c.bf16 %v921_v35, %v920_v34 }
 0x205   : > { %v936_v39 = vpack.c.bf16 %v919_v37, %v918_v36 }
 0x207   : > { %1834 = vmatprep.mubr.bf16.mxu0 %v936_v39 }
 0x208   : > { %1835 = vmatmul.mubr.bf16.gmra.mrb[60].mxu0 %v937_v38 }
 0x2a3   : > { %v1808_v41 = vpop.f32.mrb[32].mxu0 }
 0x2a4   : > { %v1052_v42 = vadd.f32 %v1808_v41, %v2179_v53  ;;  %v1043_v43 = vpop.f32.mrb[33].mxu0 }
 0x2a5   : > { %v1044_v44 = vadd.f32 %v2179_v53, %v1043_v43  ;;  %v1809_v45 = vpop.f32.mrb[34].mxu0 }
 0x2a6   : > { %v1055_v46 = vadd.f32 %v1809_v45, %v2179_v53  ;;  %v1046_v47 = vpop.f32.mrb[35].mxu0  ;;  %v1172_v49 = vmax.f32 %v1052_v42, 0.0 }
 0x2a7   : > { %v1047_v48 = vadd.f32 %v2179_v53, %v1046_v47  ;;  %v1170_v51 = vmax.f32 %v1044_v44, 0.0 }
 0x2a8   : > { %v1173_v50 = vmax.f32 %v1055_v46, 0.0 }
 0x2a9   : > { %v1171_v0 = vmax.f32 %v1047_v48, 0.0 }
 0x2aa   : > { %v1203_v52 = vpack.c.bf16 %v1173_v50, %v1172_v49 }
 0x2ab   : > { %v1202_v54 = vpack.c.bf16 %v1171_v0, %v1170_v51  ;;  %v1812_v55 = vpop.f32.mrb[36].mxu0 }
 0x2ac   : > { %v1068_v56 = vadd.f32 %v1812_v55, %v2179_v53  ;;  %v1059_v57 = vpop.f32.mrb[37].mxu0 }
 0x2ad   : > { %v1060_v58 = vadd.f32 %v2179_v53, %v1059_v57  ;;  %v1813_v59 = vpop.f32.mrb[38].mxu0  ;;  %1846 = vmatprep.mubr.msk.bf16.mxu0 %vm1257_vm1, %v1202_v54 }
 0x2ae   : > { %v1071_v60 = vadd.f32 %v1813_v59, %v2179_v53  ;;  %v1062_v61 = vpop.f32.mrb[39].mxu0  ;;  %1847 = vmatmul.mubr.msk.bf16.vlgmr.msra.gmra.mrb[64].mxu0 %vm1257_vm1, %v1203_v52  ;;  %v1176_v63 = vmax.f32 %v1068_v56, 0.0 }
 0x2af   : > { %v1063_v62 = vadd.f32 %v2179_v53, %v1062_v61  ;;  %v1174_v2 = vmax.f32 %v1060_v58, 0.0 }
 0x2b0   : > { %v1177_v1 = vmax.f32 %v1071_v60, 0.0 }
 0x2b1   : > { %v1175_v3 = vmax.f32 %v1063_v62, 0.0 }
 0x2b2   : > { %v1205_v4 = vpack.c.bf16 %v1177_v1, %v1176_v63 }
 0x2b3   : > { %v1204_v5 = vpack.c.bf16 %v1175_v3, %v1174_v2  ;;  %v1816_v6 = vpop.f32.mrb[40].mxu0 }
 0x2b4   : > { %v1084_v7 = vadd.f32 %v1816_v6, %v2179_v53  ;;  %v1075_v8 = vpop.f32.mrb[41].mxu0 }
 0x2b5   : > { %v1076_v9 = vadd.f32 %v2179_v53, %v1075_v8  ;;  %v1817_v10 = vpop.f32.mrb[42].mxu0  ;;  %1850 = vmatprep.mubr.msk.bf16.mxu1 %vm1257_vm1, %v1204_v5 }
 0x2b6   : > { %v1087_v11 = vadd.f32 %v1817_v10, %v2179_v53  ;;  %v1078_v12 = vpop.f32.mrb[43].mxu0  ;;  %1851 = vmatmul.mubr.msk.bf16.vlgmr.msra.gmra.mrb[32].mxu1 %vm1257_vm1, %v1205_v4  ;;  %v1180_v14 = vmax.f32 %v1084_v7, 0.0 }
 0x2b7   : > { %v1079_v13 = vadd.f32 %v2179_v53, %v1078_v12  ;;  %v1178_v16 = vmax.f32 %v1076_v9, 0.0 }
 0x2b8   : > { %v1181_v15 = vmax.f32 %v1087_v11, 0.0 }
 0x2b9   : > { %v1179_v17 = vmax.f32 %v1079_v13, 0.0 }
 0x2ba   : > { %v1207_v18 = vpack.c.bf16 %v1181_v15, %v1180_v14 }
 0x2bb   : > { %v1206_v19 = vpack.c.bf16 %v1179_v17, %v1178_v16  ;;  %v1820_v20 = vpop.f32.mrb[44].mxu0 }
 0x2bc   : > { %v1100_v21 = vadd.f32 %v1820_v20, %v2179_v53  ;;  %v1091_v22 = vpop.f32.mrb[45].mxu0 }
 0x2bd   : > { %v1092_v23 = vadd.f32 %v2179_v53, %v1091_v22  ;;  %v1821_v24 = vpop.f32.mrb[46].mxu0  ;;  %1854 = vmatprep.mubr.msk.bf16.mxu1 %vm1257_vm1, %v1206_v19 }
 0x2be   : > { %v1103_v25 = vadd.f32 %v1821_v24, %v2179_v53  ;;  %v1094_v26 = vpop.f32.mrb[47].mxu0  ;;  %1855 = vmatmul.mubr.msk.bf16.gmra.mrb[36].mxu1 %vm1257_vm1, %v1207_v18  ;;  %v1184_v28 = vmax.f32 %v1100_v21, 0.0 }
 0x2bf   : > { %v1095_v27 = vadd.f32 %v2179_v53, %v1094_v26  ;;  %v1182_v30 = vmax.f32 %v1092_v23, 0.0 }
 0x2c0   : > { %v1185_v29 = vmax.f32 %v1103_v25, 0.0 }
 0x2c1   : > { %v1183_v31 = vmax.f32 %v1095_v27, 0.0  ;;  %v2232_v27 = vld [vmem:[%s2316_s8] ss:$0 sm:$0xff] }
 0x2c2   : > { %v1209_v32 = vpack.c.bf16 %v1185_v29, %v1184_v28 }
 0x2c3   : > { %v1208_v33 = vpack.c.bf16 %v1183_v31, %v1182_v30  ;;  %v1824_v34 = vpop.f32.mrb[48].mxu0 }
 0x2c4   : > { %v1116_v35 = vadd.f32 %v1824_v34, %v2179_v53  ;;  %v1107_v36 = vpop.f32.mrb[49].mxu0 }
 0x2c5   : > { %v1108_v37 = vadd.f32 %v2179_v53, %v1107_v36  ;;  %v1825_v38 = vpop.f32.mrb[50].mxu0  ;;  %1858 = vmatprep.mubr.msk.bf16.mxu1 %vm1257_vm1, %v1208_v33 }
 0x2c6   : > { %v1119_v39 = vadd.f32 %v1825_v38, %v2179_v53  ;;  %v1110_v40 = vpop.f32.mrb[51].mxu0  ;;  %1859 = vmatmul.mubr.msk.bf16.gmra.mrb[40].mxu1 %vm1257_vm1, %v1209_v32  ;;  %v1188_v42 = vmax.f32 %v1116_v35, 0.0 }
 0x2c7   : > { %v1111_v41 = vadd.f32 %v2179_v53, %v1110_v40  ;;  %v1186_v44 = vmax.f32 %v1108_v37, 0.0 }
 0x2c8   : > { %v1189_v43 = vmax.f32 %v1119_v39, 0.0 }
 0x2c9   : > { %v1187_v45 = vmax.f32 %v1111_v41, 0.0 }
 0x2ca   : > { %v1211_v46 = vpack.c.bf16 %v1189_v43, %v1188_v42 }
 0x2cb   : > { %v1210_v47 = vpack.c.bf16 %v1187_v45, %v1186_v44  ;;  %v1828_v48 = vpop.f32.mrb[52].mxu0 }
 0x2cc   : > { %v1132_v49 = vadd.f32 %v1828_v48, %v2179_v53  ;;  %v1123_v50 = vpop.f32.mrb[53].mxu0 }
 0x2cd   : > { %v1124_v51 = vadd.f32 %v2179_v53, %v1123_v50  ;;  %v1829_v0 = vpop.f32.mrb[54].mxu0  ;;  %1862 = vmatprep.mubr.msk.bf16.mxu1 %vm1257_vm1, %v1210_v47 }
 0x2ce   : > { %v1135_v52 = vadd.f32 %v1829_v0, %v2179_v53  ;;  %v1126_v54 = vpop.f32.mrb[55].mxu0  ;;  %1863 = vmatmul.mubr.msk.bf16.gmra.mrb[44].mxu1 %vm1257_vm1, %v1211_v46  ;;  %v1192_v56 = vmax.f32 %v1132_v49, 0.0 }
 0x2cf   : > { %v1127_v55 = vadd.f32 %v2179_v53, %v1126_v54  ;;  %v1190_v58 = vmax.f32 %v1124_v51, 0.0 }
 0x2d0   : > { %v1193_v57 = vmax.f32 %v1135_v52, 0.0 }
 0x2d1   : > { %v1191_v59 = vmax.f32 %v1127_v55, 0.0 }
 0x2d2   : > { %v1213_v60 = vpack.c.bf16 %v1193_v57, %v1192_v56 }
 0x2d3   : > { %v1212_v61 = vpack.c.bf16 %v1191_v59, %v1190_v58  ;;  %v1832_v62 = vpop.f32.mrb[56].mxu0 }
 0x2d4   : > { %v1148_v63 = vadd.f32 %v1832_v62, %v2179_v53  ;;  %v1139_v1 = vpop.f32.mrb[57].mxu0 }
 0x2d5   : > { %v1140_v2 = vadd.f32 %v2179_v53, %v1139_v1  ;;  %v1833_v3 = vpop.f32.mrb[58].mxu0  ;;  %1866 = vmatprep.mubr.msk.bf16.mxu1 %vm1257_vm1, %v1212_v61 }
 0x2d6   : > { %v1151_v4 = vadd.f32 %v1833_v3, %v2179_v53  ;;  %v1142_v5 = vpop.f32.mrb[59].mxu0  ;;  %1867 = vmatmul.mubr.msk.bf16.gmra.mrb[48].mxu1 %vm1257_vm1, %v1213_v60  ;;  %v1196_v7 = vmax.f32 %v1148_v63, 0.0 }
 0x2d7   : > { %v1143_v6 = vadd.f32 %v2179_v53, %v1142_v5  ;;  %v1194_v9 = vmax.f32 %v1140_v2, 0.0 }
 0x2d8   : > { %v1197_v8 = vmax.f32 %v1151_v4, 0.0 }
 0x2d9   : > { %v1195_v10 = vmax.f32 %v1143_v6, 0.0 }
 0x2da   : > { %v1215_v11 = vpack.c.bf16 %v1197_v8, %v1196_v7 }
 0x2db   : > { %v1214_v12 = vpack.c.bf16 %v1195_v10, %v1194_v9  ;;  %v1836_v13 = vpop.f32.mrb[60].mxu0 }
 0x2dc   : > { %v1164_v14 = vadd.f32 %v1836_v13, %v2179_v53  ;;  %v1155_v15 = vpop.f32.mrb[61].mxu0 }
 0x2dd   : > { %v1156_v16 = vadd.f32 %v2179_v53, %v1155_v15  ;;  %v1837_v17 = vpop.f32.mrb[62].mxu0  ;;  %1870 = vmatprep.mubr.msk.bf16.mxu1 %vm1257_vm1, %v1214_v12 }
 0x2de   : > { %v1167_v18 = vadd.f32 %v1837_v17, %v2179_v53  ;;  %v1158_v19 = vpop.f32.mrb[63].mxu0  ;;  %1871 = vmatmul.mubr.msk.bf16.gmra.mrb[52].mxu1 %vm1257_vm1, %v1215_v11  ;;  %v1200_v21 = vmax.f32 %v1164_v14, 0.0 }
 0x2df   : > { %v1159_v20 = vadd.f32 %v2179_v53, %v1158_v19  ;;  %v1198_v23 = vmax.f32 %v1156_v16, 0.0 }
 0x2e0   : > { %v1201_v22 = vmax.f32 %v1167_v18, 0.0 }
 0x2e1   : > { %v1199_v24 = vmax.f32 %v1159_v20, 0.0 }
 0x2e2   : > { %v1217_v25 = vpack.c.bf16 %v1201_v22, %v1200_v21 }
 0x2e3   : > { %v1216_v26 = vpack.c.bf16 %v1199_v24, %v1198_v23 }
 0x2e5   : > { %1874 = vmatprep.mubr.msk.bf16.mxu1 %vm1257_vm1, %v1216_v26 }
 0x2e6   : > { %1875 = vmatmul.mubr.msk.bf16.gmra.mrb[56].mxu1 %vm1257_vm1, %v1217_v25 }
 0x381   : > { %v1848_v53 = vpop.f32.mrb[64].mxu0 }
 0x382   : > { %v1349_v28 = vadd.f32 %v1848_v53, %v2232_v27  ;;  %v1340_v29 = vpop.f32.mrb[65].mxu0 }
 0x383   : > { %v1341_v30 = vadd.f32 %v2232_v27, %v1340_v29  ;;  %v1849_v31 = vpop.f32.mrb[66].mxu0 }
 0x384   : > { %1469 = vst [vmem:[%s2239_s12 + $0x10] sm:$0xff] %v1349_v28  ;;  %v1352_v32 = vadd.f32 %v1849_v31, %v2232_v27  ;;  %v1343_v33 = vpop.f32.mrb[67].mxu0 }
 0x385   : > { %1467 = vst [vmem:[%s2239_s12] sm:$0xff] %v1341_v30  ;;  %v1344_v34 = vadd.f32 %v2232_v27, %v1343_v33 }
 0x386   : > { %1470 = vst [vmem:[%s2239_s12 + $0x18] sm:$0xff] %v1352_v32 }
 0x387   : > { %1468 = vst [vmem:[%s2239_s12 + $0x8] sm:$0xff] %v1344_v34 }
 0x389   : > { %v1852_v35 = vpop.f32.mrb[32].mxu1 }
 0x38a   : > { %v1365_v36 = vadd.f32 %v1852_v35, %v2232_v27  ;;  %v1356_v37 = vpop.f32.mrb[33].mxu1 }
 0x38b   : > { %v1357_v38 = vadd.f32 %v2232_v27, %v1356_v37  ;;  %v1853_v39 = vpop.f32.mrb[34].mxu1 }
 0x38c   : > { %1473 = vst [vmem:[%s2239_s12 + $0x30] sm:$0xff] %v1365_v36  ;;  %v1368_v40 = vadd.f32 %v1853_v39, %v2232_v27  ;;  %v1359_v41 = vpop.f32.mrb[35].mxu1 }
 0x38d   : > { %1471 = vst [vmem:[%s2239_s12 + $0x20] sm:$0xff] %v1357_v38  ;;  %v1360_v42 = vadd.f32 %v2232_v27, %v1359_v41 }
 0x38e   : > { %1474 = vst [vmem:[%s2239_s12 + $0x38] sm:$0xff] %v1368_v40 }
 0x38f   : > { %1472 = vst [vmem:[%s2239_s12 + $0x28] sm:$0xff] %v1360_v42 }
 0x391   : > { %v1856_v43 = vpop.f32.mrb[36].mxu1 }
 0x392   : > { %v1381_v44 = vadd.f32 %v1856_v43, %v2232_v27  ;;  %v1372_v45 = vpop.f32.mrb[37].mxu1 }
 0x393   : > { %v1373_v46 = vadd.f32 %v2232_v27, %v1372_v45  ;;  %v1857_v47 = vpop.f32.mrb[38].mxu1 }
 0x394   : > { %1477 = vst [vmem:[%s2239_s12 + $0x50] sm:$0xff] %v1381_v44  ;;  %v1384_v48 = vadd.f32 %v1857_v47, %v2232_v27  ;;  %v1375_v49 = vpop.f32.mrb[39].mxu1 }
 0x395   : > { %1475 = vst [vmem:[%s2239_s12 + $0x40] sm:$0xff] %v1373_v46  ;;  %v1376_v50 = vadd.f32 %v2232_v27, %v1375_v49 }
 0x396   : > { %1478 = vst [vmem:[%s2239_s12 + $0x58] sm:$0xff] %v1384_v48 }
 0x397   : > { %1476 = vst [vmem:[%s2239_s12 + $0x48] sm:$0xff] %v1376_v50 }
 0x399   : > { %v1860_v51 = vpop.f32.mrb[40].mxu1 }
 0x39a   : > { %v1397_v0 = vadd.f32 %v1860_v51, %v2232_v27  ;;  %v1388_v52 = vpop.f32.mrb[41].mxu1 }
 0x39b   : > { %v1389_v54 = vadd.f32 %v2232_v27, %v1388_v52  ;;  %v1861_v55 = vpop.f32.mrb[42].mxu1 }
 0x39c   : > { %1481 = vst [vmem:[%s2239_s12 + $0x70] sm:$0xff] %v1397_v0  ;;  %v1400_v56 = vadd.f32 %v1861_v55, %v2232_v27  ;;  %v1391_v57 = vpop.f32.mrb[43].mxu1 }
 0x39d   : > { %1479 = vst [vmem:[%s2239_s12 + $0x60] sm:$0xff] %v1389_v54  ;;  %v1392_v58 = vadd.f32 %v2232_v27, %v1391_v57 }
 0x39e   : > { %1482 = vst [vmem:[%s2239_s12 + $0x78] sm:$0xff] %v1400_v56 }
 0x39f   : > { %1480 = vst [vmem:[%s2239_s12 + $0x68] sm:$0xff] %v1392_v58 }
 0x3a1   : > { %v1864_v59 = vpop.f32.mrb[44].mxu1 }
 0x3a2   : > { %v1413_v60 = vadd.f32 %v1864_v59, %v2232_v27  ;;  %v1404_v61 = vpop.f32.mrb[45].mxu1 }
 0x3a3   : > { %v1405_v62 = vadd.f32 %v2232_v27, %v1404_v61  ;;  %v1865_v63 = vpop.f32.mrb[46].mxu1 }
 0x3a4   : > { %1485 = vst [vmem:[%s2239_s12 + $0x90] sm:$0xff] %v1413_v60  ;;  %v1416_v1 = vadd.f32 %v1865_v63, %v2232_v27  ;;  %v1407_v2 = vpop.f32.mrb[47].mxu1 }
 0x3a5   : > { %1483 = vst [vmem:[%s2239_s12 + $0x80] sm:$0xff] %v1405_v62  ;;  %v1408_v3 = vadd.f32 %v2232_v27, %v1407_v2 }
 0x3a6   : > { %1486 = vst [vmem:[%s2239_s12 + $0x98] sm:$0xff] %v1416_v1 }
 0x3a7   : > { %1484 = vst [vmem:[%s2239_s12 + $0x88] sm:$0xff] %v1408_v3 }
 0x3a9   : > { %v1868_v4 = vpop.f32.mrb[48].mxu1 }
 0x3aa   : > { %v1429_v5 = vadd.f32 %v1868_v4, %v2232_v27  ;;  %v1420_v6 = vpop.f32.mrb[49].mxu1 }
 0x3ab   : > { %v1421_v7 = vadd.f32 %v2232_v27, %v1420_v6  ;;  %v1869_v8 = vpop.f32.mrb[50].mxu1 }
 0x3ac   : > { %1489 = vst [vmem:[%s2239_s12 + $0xb0] sm:$0xff] %v1429_v5  ;;  %v1432_v9 = vadd.f32 %v1869_v8, %v2232_v27  ;;  %v1423_v10 = vpop.f32.mrb[51].mxu1 }
 0x3ad   : > { %1487 = vst [vmem:[%s2239_s12 + $0xa0] sm:$0xff] %v1421_v7  ;;  %v1424_v11 = vadd.f32 %v2232_v27, %v1423_v10 }
 0x3ae   : > { %1490 = vst [vmem:[%s2239_s12 + $0xb8] sm:$0xff] %v1432_v9 }
 0x3af   : > { %1488 = vst [vmem:[%s2239_s12 + $0xa8] sm:$0xff] %v1424_v11 }
 0x3b1   : > { %v1872_v12 = vpop.f32.mrb[52].mxu1 }
 0x3b2   : > { %v1445_v13 = vadd.f32 %v1872_v12, %v2232_v27  ;;  %v1436_v14 = vpop.f32.mrb[53].mxu1 }
 0x3b3   : > { %v1437_v15 = vadd.f32 %v2232_v27, %v1436_v14  ;;  %v1873_v16 = vpop.f32.mrb[54].mxu1 }
 0x3b4   : > { %1493 = vst [vmem:[%s2239_s12 + $0xd0] sm:$0xff] %v1445_v13  ;;  %v1448_v17 = vadd.f32 %v1873_v16, %v2232_v27  ;;  %v1439_v18 = vpop.f32.mrb[55].mxu1 }
 0x3b5   : > { %1491 = vst [vmem:[%s2239_s12 + $0xc0] sm:$0xff] %v1437_v15  ;;  %v1440_v19 = vadd.f32 %v2232_v27, %v1439_v18 }
 0x3b6   : > { %1494 = vst [vmem:[%s2239_s12 + $0xd8] sm:$0xff] %v1448_v17 }
 0x3b7   : > { %1492 = vst [vmem:[%s2239_s12 + $0xc8] sm:$0xff] %v1440_v19 }
 0x3b9   : > { %v1876_v20 = vpop.f32.mrb[56].mxu1 }
 0x3ba   : > { %v1461_v21 = vadd.f32 %v1876_v20, %v2232_v27  ;;  %v1452_v22 = vpop.f32.mrb[57].mxu1 }
 0x3bb   : > { %v1453_v23 = vadd.f32 %v2232_v27, %v1452_v22  ;;  %v1877_v24 = vpop.f32.mrb[58].mxu1 }
 0x3bc   : > { %1497 = vst [vmem:[%s2239_s12 + $0xf0] sm:$0xff] %v1461_v21  ;;  %v1464_v25 = vadd.f32 %v1877_v24, %v2232_v27  ;;  %v1455_v26 = vpop.f32.mrb[59].mxu1 }
 0x3bd   : > { %1495 = vst [vmem:[%s2239_s12 + $0xe0] sm:$0xff] %v1453_v23  ;;  %v1456_v53 = vadd.f32 %v2232_v27, %v1455_v26 }
 0x3be   : > { %1498 = vst [vmem:[%s2239_s12 + $0xf8] sm:$0xff] %v1464_v25 }
 0x3bf   : > { %1496 = vst [vmem:[%s2239_s12 + $0xe8] sm:$0xff] %v1456_v53 }
 0x3c0 PF: > { %s19_s30 = sadd.s32 1, %s1921_s30  }
 0x3c1   : > { %p16_p4 = scmp.ge.s32.totalorder %s19_s30, 4  }
 0x3c3   :  { %18 = sbr.rel (!%p16_p4) target bundleno = 1 (0x1), region = 86 }

</bundles_post_ra>
